<compile_context>
chip_gen: v6e
topology: v6e:2x2x1
jax: 0.10.0
libtpu: 0.0.40
codegen_flags: <defaults>
</compile_context>

<pallas_src>
import jax
import jax.numpy as jnp
from jax import lax
from jax.experimental import pallas as pl
from jax.experimental.pallas import tpu as pltpu


# ---------------------------------------------------------------------------
# Tiny-batch path (e.g. the spec's B=1): whole problem in one block, VPU only.
# ---------------------------------------------------------------------------
def _small_kernel(x_ref, wt_ref, other_ref, o_ref):
    # x: (B, K), wt: (K, N) [weight pre-transposed at trace time], other: (1, N)
    x = x_ref[...]
    wt = wt_ref[...]
    K = wt.shape[0]
    acc = jnp.zeros((x.shape[0], wt.shape[1]), jnp.float32)
    for k in range(K):                       # K == 5: fully unrolled VPU MACs
        acc = acc + x[:, k:k + 1] * wt[k:k + 1, :]
    o_ref[...] = (acc + other_ref[...]).astype(o_ref.dtype)


# ---------------------------------------------------------------------------
# Large-batch path: lane-dense (N, B) orientation, batch on the 128-lane axis.
# ---------------------------------------------------------------------------
def _lane_dense_kernel(xT_ref, w_ref, other_ref, o_ref):
    # xT: (K, TB), w: (N, K), other: (N, 1) -> out: (N, TB)
    acc = lax.dot_general(
        w_ref[...], xT_ref[...],
        dimension_numbers=(((1,), (0,)), ((), ())),     # canonical W @ x.T
        preferred_element_type=jnp.float32,
        precision=lax.Precision.HIGHEST,
    )
    o_ref[...] = (acc + other_ref[...]).astype(o_ref.dtype)


def _round_up(x, m):
    return ((x + m - 1) // m) * m


@jax.jit
def linear_add(x, w, other):
    """x: (B, K) f32, w: (N, K) [PyTorch Linear weight layout], other: (N,)."""
    B, K = x.shape
    N = w.shape[0]

    cost = pl.CostEstimate(
        flops=2 * B * K * N,
        transcendentals=0,
        bytes_accessed=4 * (B * K + N * K + B * N + N),
    )

    if B <= 64:
        # ---- tiny-batch path -------------------------------------------------
        wt = w.T                          # trace-time transpose of a tiny param
        other2d = other.reshape(1, N)
        return pl.pallas_call(
            _small_kernel,
            out_shape=jax.ShapeDtypeStruct((B, N), x.dtype),
            grid_spec=pltpu.PrefetchScalarGridSpec(
                num_scalar_prefetch=0,
                grid=(1,),
                in_specs=[
                    pl.BlockSpec((B, K), lambda i: (0, 0)),
                    pl.BlockSpec((K, N), lambda i: (0, 0)),
                    pl.BlockSpec((1, N), lambda i: (0, 0)),
                ],
                out_specs=pl.BlockSpec((B, N), lambda i: (0, 0)),
            ),
            cost_estimate=cost,
        )(x, wt, other2d)

    # ---- large-batch path: lane-dense orientation ------------------------
    xT = x.T                              # (K, B) layout plumbing inside the jit
    otherc = other.reshape(N, 1)

    B_pad = _round_up(B, 128)
    tb = min(B_pad, 16384)                # big tiles: amortize per-step overhead
    # Keep >= 2 grid steps when there is enough work so both v7x TensorCores
    # get a share (harmless on v5e/v6e, which have a single TC).
    if B_pad >= 512 and pl.cdiv(B_pad, tb) < 2:
        tb = _round_up(pl.cdiv(B_pad, 2), 128)

    yT = pl.pallas_call(
        _lane_dense_kernel,
        out_shape=jax.ShapeDtypeStruct((N, B), x.dtype),
        grid_spec=pltpu.PrefetchScalarGridSpec(
            num_scalar_prefetch=0,
            grid=(pl.cdiv(B, tb),),
            in_specs=[
                pl.BlockSpec((K, tb), lambda i: (0, i)),   # x.T tile (lane-dense)
                pl.BlockSpec((N, K), lambda i: (0, 0)),    # full weight, resident
                pl.BlockSpec((N, 1), lambda i: (0, 0)),    # bias-like column
            ],
            out_specs=pl.BlockSpec((N, tb), lambda i: (0, i)),   # lane-dense out
        ),
        compiler_params=pltpu.CompilerParams(
            dimension_semantics=("parallel",),
        ),
        cost_estimate=cost,
    )(xT, w, otherc)
    return yT.T                           # back to the module's (B, N) layout


if __name__ == "__main__":
    key = jax.random.PRNGKey(0)
    kx, kw, ko, kb = jax.random.split(key, 4)

    # Deterministic "parameters" matching the PyTorch module shapes.
    x1 = jax.random.normal(kx, (1, 5), dtype=jnp.float32)        # spec input
    w = jax.random.normal(kw, (10, 5), dtype=jnp.float32) * 0.1  # Linear(5,10).weight
    other = jax.random.normal(ko, (10,), dtype=jnp.float32)      # extra parameter

    # Spec case (B=1) -> tiny VPU path.
    out = linear_add(x1, w, other)
    jax.block_until_ready(out)
    ref = x1 @ w.T + other
    assert out.shape == (1, 10)
    assert jnp.allclose(out, ref, atol=1e-5, rtol=1e-5)

    # Also exercise the lane-dense large-batch path.
    xb = jax.random.normal(kb, (256, 5), dtype=jnp.float32)
    outb = linear_add(xb, w, other)
    jax.block_until_ready(outb)
    refb = xb @ w.T + other
    assert outb.shape == (256, 10)
    assert jnp.allclose(outb, refb, atol=1e-4, rtol=1e-4)

    print("KERNEL_OK")
</pallas_src>

<mosaic_0001>
module attributes {stable_mosaic.version = 11 : i64} {
  func.func @_small_kernel(%arg0: i32, %arg1: memref<1x5xf32, #tpu.memory_space<vmem>>, %arg2: memref<5x10xf32, #tpu.memory_space<vmem>>, %arg3: memref<1x10xf32, #tpu.memory_space<vmem>>, %arg4: memref<1x10xf32, #tpu.memory_space<vmem>>) attributes {dimension_semantics = [#tpu.dimension_semantics<arbitrary>], iteration_bounds = array<i64: 1>, scalar_prefetch = 0 : i64, scratch_operands = 0 : i64, tpu.core_type = #tpu.core_type<tc>, window_params = [{pipeline_mode = #tpu.pipeline_mode<synchronous>, transform_indices = @transform_0, window_bounds = array<i64: 1, 5>}, {pipeline_mode = #tpu.pipeline_mode<synchronous>, transform_indices = @transform_1, window_bounds = array<i64: 5, 10>}, {pipeline_mode = #tpu.pipeline_mode<synchronous>, transform_indices = @transform_2, window_bounds = array<i64: 1, 10>}, {pipeline_mode = #tpu.pipeline_mode<synchronous>, transform_indices = @transform_3, window_bounds = array<i64: 1, 10>}]} {
    %c0 = arith.constant 0 : index
    %c0_0 = arith.constant 0 : index
    %0 = vector.load %arg1[%c0, %c0_0] : memref<1x5xf32, #tpu.memory_space<vmem>>, vector<1x5xf32>
    %c0_1 = arith.constant 0 : index
    %c0_2 = arith.constant 0 : index
    %1 = vector.load %arg2[%c0_1, %c0_2] : memref<5x10xf32, #tpu.memory_space<vmem>>, vector<5x10xf32>
    %cst = arith.constant 0.000000e+00 : f32
    %2 = vector.broadcast %cst : f32 to vector<1x10xf32>
    %3 = vector.extract_strided_slice %0 {offsets = [0, 0], sizes = [1, 1], strides = [1, 1]} : vector<1x5xf32> to vector<1x1xf32>
    %4 = vector.extract_strided_slice %1 {offsets = [0, 0], sizes = [1, 10], strides = [1, 1]} : vector<5x10xf32> to vector<1x10xf32>
    %5 = vector.broadcast %3 : vector<1x1xf32> to vector<1x10xf32>
    %6 = arith.mulf %5, %4 : vector<1x10xf32>
    %7 = arith.addf %2, %6 : vector<1x10xf32>
    %8 = vector.extract_strided_slice %0 {offsets = [0, 1], sizes = [1, 1], strides = [1, 1]} : vector<1x5xf32> to vector<1x1xf32>
    %9 = vector.extract_strided_slice %1 {offsets = [1, 0], sizes = [1, 10], strides = [1, 1]} : vector<5x10xf32> to vector<1x10xf32>
    %10 = vector.broadcast %8 : vector<1x1xf32> to vector<1x10xf32>
    %11 = arith.mulf %10, %9 : vector<1x10xf32>
    %12 = arith.addf %7, %11 : vector<1x10xf32>
    %13 = vector.extract_strided_slice %0 {offsets = [0, 2], sizes = [1, 1], strides = [1, 1]} : vector<1x5xf32> to vector<1x1xf32>
    %14 = vector.extract_strided_slice %1 {offsets = [2, 0], sizes = [1, 10], strides = [1, 1]} : vector<5x10xf32> to vector<1x10xf32>
    %15 = vector.broadcast %13 : vector<1x1xf32> to vector<1x10xf32>
    %16 = arith.mulf %15, %14 : vector<1x10xf32>
    %17 = arith.addf %12, %16 : vector<1x10xf32>
    %18 = vector.extract_strided_slice %0 {offsets = [0, 3], sizes = [1, 1], strides = [1, 1]} : vector<1x5xf32> to vector<1x1xf32>
    %19 = vector.extract_strided_slice %1 {offsets = [3, 0], sizes = [1, 10], strides = [1, 1]} : vector<5x10xf32> to vector<1x10xf32>
    %20 = vector.broadcast %18 : vector<1x1xf32> to vector<1x10xf32>
    %21 = arith.mulf %20, %19 : vector<1x10xf32>
    %22 = arith.addf %17, %21 : vector<1x10xf32>
    %23 = vector.extract_strided_slice %0 {offsets = [0, 4], sizes = [1, 1], strides = [1, 1]} : vector<1x5xf32> to vector<1x1xf32>
    %24 = vector.extract_strided_slice %1 {offsets = [4, 0], sizes = [1, 10], strides = [1, 1]} : vector<5x10xf32> to vector<1x10xf32>
    %25 = vector.broadcast %23 : vector<1x1xf32> to vector<1x10xf32>
    %26 = arith.mulf %25, %24 : vector<1x10xf32>
    %27 = arith.addf %22, %26 : vector<1x10xf32>
    %c0_3 = arith.constant 0 : index
    %c0_4 = arith.constant 0 : index
    %28 = vector.load %arg3[%c0_3, %c0_4] : memref<1x10xf32, #tpu.memory_space<vmem>>, vector<1x10xf32>
    %29 = arith.addf %27, %28 : vector<1x10xf32>
    %c0_5 = arith.constant 0 : index
    %c0_6 = arith.constant 0 : index
    %30 = vector.load %arg4[%c0_5, %c0_6] : memref<1x10xf32, #tpu.memory_space<vmem>>, vector<1x10xf32>
    tpu.vector_store %arg4[%c0_5, %c0_6], %29 {strides = array<i32>} : memref<1x10xf32, #tpu.memory_space<vmem>>, vector<1x10xf32>,
    return
  }
  func.func @transform_0(%arg0: i32) -> (i32, i32) {
    %c0_i32 = arith.constant 0 : i32
    %c0_i32_0 = arith.constant 0 : i32
    %c0_i32_1 = arith.constant 0 : i32
    return %c0_i32, %c0_i32_0 : i32, i32
  }
  func.func @transform_1(%arg0: i32) -> (i32, i32) {
    %c0_i32 = arith.constant 0 : i32
    %c0_i32_0 = arith.constant 0 : i32
    %c0_i32_1 = arith.constant 0 : i32
    return %c0_i32, %c0_i32_0 : i32, i32
  }
  func.func @transform_2(%arg0: i32) -> (i32, i32) {
    %c0_i32 = arith.constant 0 : i32
    %c0_i32_0 = arith.constant 0 : i32
    %c0_i32_1 = arith.constant 0 : i32
    return %c0_i32, %c0_i32_0 : i32, i32
  }
  func.func @transform_3(%arg0: i32) -> (i32, i32) {
    %c0_i32 = arith.constant 0 : i32
    %c0_i32_0 = arith.constant 0 : i32
    %c0_i32_1 = arith.constant 0 : i32
    return %c0_i32, %c0_i32_0 : i32, i32
  }
}

</mosaic_0001>

<bundles_post_ra>
// kernel: linear_add.1
= control target key start
LH: loop header
LB: loop body
LE: loop exit
PB: predicated region body
PF: predicated region fallthrough
CT: control target
= control target key end

     0   :  { %8 = vsyncpa [#allocation3], 0  ;;  %s207_s0 = inlined_call_operand.vmem [shape: f32[1,5], index: 0, kind: input, shape index: {}]   ;;  %s208_s1 = inlined_call_operand.hbm [shape: f32[5,10], index: 1, kind: input, shape index: {}]   ;;  %s209_s2 = inlined_call_operand.vmem [shape: f32[1,10], index: 2, kind: input, shape index: {}]   ;;  %s210_s3 = inlined_call_operand.hbm [shape: f32[1,10], index: 3, kind: output, shape index: {}]  }
   0x1   :  { %9 = vsyncpa [#allocation4], 0  ;;  %s168_s12 = smov [#allocation2]  }
   0x2   :  { %s18_s13 = sshll.u32 %s168_s12, 4  ;;  %s19_s13 = int_to_ptr.vmem [resolvable:$true] %s18_s13 }
   0x3   :  { %s132_s14 = scalar_lea.vmem %s19_s13, 128  ;;  %p137_p1 = scmp.lt.s32.totalorder %s19_s13, %s19_s13 }
   0x4   :  { %p133_p0 = scmp.ne.s32.totalorder %s19_s13, %s132_s14  ;;  %p138_p2 = scmp.lt.s32.totalorder %s132_s14, %s132_s14 }
   0x6   :  { %p139_p3 = por %p138_p2, %p137_p1 }
   0x8   :  { %p140_p4 = pnand %p139_p3, %p133_p0 }
   0xa   :  { %143 = shalt.err (!%p140_p4)
}
   0xb   :  { %21 = dma.hbm_to_vmem [thread:$0]  %s208_s1, 128, %s19_s13, [#allocation3]  }
   0xc   :  { %164 = dma.done.wait [#allocation3], 128  }
   0xd   :  { %165 = vsyncadd [#allocation3], 4294967168  ;;  %v169_v0 = vmov 2   ;;  %v170_v1 = vmov 1   ;;  %v27_v2 = vld [vmem:[%s207_s0] sm:$0x1]  ;;  %v34_v6 = vlaneseq }
   0xe   :  { %120 = vset.pattern.permute.xlu1 %v169_v0  ;;  %118 = vset.pattern.permute.xlu0 %v170_v1  ;;  %v171_v3 = vmov 3   ;;  %v172_v4 = vmov 0   ;;  %v173_v5 = vmov 4   ;;  %v28_v11 = vld [vmem:[#allocation2] sm:$0x1f]  ;;  %s174_s19 = smov [#allocation5]  }
   0xf   :  { %54 = vperm.xlu1 %120, %v27_v2   ;;  %41 = vperm.xlu0 %118, %v27_v2   ;;  %v35_v7 = vshrl.u32 %v34_v6, 7  ;;  %v92_v32 = vld [vmem:[%s209_s2] sm:$0x1]  ;;  %s102_s20 = sshll.u32 %s174_s19, 4  ;;  %vm94_vm0 = vcmask 73728   ;;  %s103_s20 = int_to_ptr.vmem [resolvable:$true] %s102_s20 }
  0x10   :  { %s144_s21 = scalar_lea.vmem %s103_s20, 16  ;;  %s148_s22 = scalar_lea.vmem %s103_s20, 32 }
  0x11   :  { %v36_v8 = vsub.s32 0, %v35_v7  ;;  %p145_p5 = scmp.ne.s32.totalorder %s103_s20, %s144_s21  ;;  %p149_p6 = scmp.lt.s32.totalorder %s103_s20, %s103_s20 }
  0x12   :  { %p150_p7 = scmp.lt.s32.totalorder %s148_s22, %s144_s21 }
  0x13   :  { %121 = vset.pattern.permute.xlu1 %v171_v3  ;;  %119 = vset.pattern.permute.xlu0 %v172_v4 }
  0x14   :  { %67 = vperm.xlu1 %121, %v27_v2   ;;  %31 = vperm.xlu0 %119, %v27_v2   ;;  %p151_p8 = por %p150_p7, %p149_p6 }
  0x16   :  { %p152_p9 = pnand %p151_p8, %p145_p5 }
  0x18   :  { %122 = vset.pattern.permute.xlu1 %v173_v5  ;;  %123 = vset.pattern.permute.xlu0 %v173_v5 }
  0x19   :  { %80 = vperm.xlu1 %122, %v27_v2  }
  0x8a   :  { %v55_v9 = vpop.permute.xlu1 %54  ;;  %v42_v10 = vpop.permute.xlu0 %41 }
  0x8b   :  { %v47_v12 = vrot.slane %v42_v10, %v36_v8  ;;  %v60_v13 = vrot.slane %v55_v9, %v36_v8 }
  0x8d   :  { %v48_v14 = vmul.f32 %v47_v12, %v28_v11  ;;  %v61_v17 = vmul.f32 %v60_v13, %v28_v11 }
  0x8f   :  { %v68_v15 = vpop.permute.xlu1 %67  ;;  %v32_v16 = vpop.permute.xlu0 %31  ;;  %v50_v20 = vrot.slane %v48_v14, 1  ;;  %v63_v23 = vrot.slane %v61_v17, 2 }
  0x90   :  { %v73_v18 = vrot.slane %v68_v15, %v36_v8  ;;  %v37_v19 = vrot.slane %v32_v16, %v36_v8 }
  0x92   :  { %v74_v21 = vmul.f32 %v73_v18, %v28_v11  ;;  %v38_v22 = vmul.f32 %v37_v19, %v28_v11 }
  0x94   :  { %v52_v24 = vadd.f32 %v50_v20, %v38_v22  ;;  %v81_v25 = vpop.permute.xlu1 %80  ;;  %v76_v27 = vrot.slane %v74_v21, 3 }
  0x95   :  { %v86_v26 = vrot.slane %v81_v25, %v36_v8 }
  0x96   :  { %v65_v28 = vadd.f32 %v63_v23, %v52_v24 }
  0x97   :  { %v87_v29 = vmul.f32 %v86_v26, %v28_v11 }
  0x98   :  { %v78_v30 = vadd.f32 %v76_v27, %v65_v28 }
  0x99   :  { %v89_v31 = vrot.slane %v87_v29, 4 }
  0x9b   :  { %v91_v33 = vadd.f32 %v89_v31, %v78_v30 }
  0x9d   :  { %v93_v34 = vadd.f32 %v92_v32, %v91_v33 }
  0x9f   :  { %95 = vst.msk [vmem:[#allocation5] sm:$0x1] %vm94_vm0, %v93_v34 }
  0xa0   :  { %155 = shalt.err (!%p152_p9)
}
  0xa1   :  { %105 = dma.vmem_to_hbm [thread:$0]  %s103_s20, 16, %s210_s3, [#allocation4]  }
  0xa2   :  { %166 = dma.done.wait [#allocation4], 16  }
  0xa3   :  { %167 = vsyncadd [#allocation4], 4294967280 }
  0xa4   :  { %109 = vsyncpa [#allocation3], 1 }
  0xa5   :  { %110 = vsyncpa [#allocation4], 1 }

</bundles_post_ra>
